<compile_context>
chip_gen: v7x
topology: tpu7x:2x2x1
jax: 0.10.0
libtpu: 0.0.40
codegen_flags: <defaults>
</compile_context>

<pallas_src>
import functools
import math

import jax
import jax.numpy as jnp
import numpy as np
from jax import lax
from jax.experimental import pallas as pl
from jax.experimental.pallas import tpu as pltpu


def _mha_head_kernel(dim_per_head,
                     q_ref, k_ref, v_ref, neg_ref,
                     wq_ref, bq_ref, wk_ref, bk_ref, wv_ref, bv_ref,
                     wf_ref, bf_ref,
                     out_ref, attn_ref):
    """One grid step handles one (batch, head) pair."""
    h = pl.program_id(1)

    q_in = q_ref[0]          # (Sq, D) bf16
    k_in = k_ref[0]          # (Sk, D) bf16
    v_in = v_ref[0]          # (Sk, D) bf16

    # Per-head Q/K/V projections: contraction over the full model dim D, f32 accumulate.
    Qh = jnp.dot(q_in, wq_ref[0], preferred_element_type=jnp.float32) + bq_ref[0]
    Kh = jnp.dot(k_in, wk_ref[0], preferred_element_type=jnp.float32) + bk_ref[0]
    Vh = jnp.dot(v_in, wv_ref[0], preferred_element_type=jnp.float32) + bv_ref[0]

    scale = 1.0 / math.sqrt(dim_per_head)
    Qh = (Qh * scale).astype(jnp.bfloat16)
    Kh = Kh.astype(jnp.bfloat16)
    Vh = Vh.astype(jnp.bfloat16)

    # Scores (Sq, Sk): contract over dim_per_head; MXU handles the K "transpose".
    s = lax.dot_general(Qh, Kh, (((1,), (1,)), ((), ())),
                        preferred_element_type=jnp.float32)
    s = s + neg_ref[0].astype(jnp.float32)      # precomputed additive mask (0 / -1e18)

    # Softmax with approx reciprocal (EUP slot) instead of a VPU divide.
    m = jnp.max(s, axis=-1, keepdims=True)
    p = jnp.exp(s - m)
    l = jnp.sum(p, axis=-1, keepdims=True)
    p = p * pl.reciprocal(l, approx=True)

    attn_ref[0, 0] = p.astype(attn_ref.dtype)

    # TODO(synk): dropout is identity here (eval mode); training-mode RNG dropout not implemented.
    ctx = jnp.dot(p.astype(jnp.bfloat16), Vh,
                  preferred_element_type=jnp.float32)            # (Sq, d)

    # Per-head slice of the final linear: out += ctx_h @ Wf[h*d:(h+1)*d, :]
    partial = jnp.dot(ctx.astype(jnp.bfloat16), wf_ref[0],
                      preferred_element_type=jnp.float32)        # (Sq, D)

    @pl.when(h == 0)
    def _init():
        out_ref[0] = jnp.broadcast_to(bf_ref[...], partial.shape).astype(out_ref.dtype)

    out_ref[0] += partial.astype(out_ref.dtype)


def multi_headed_attention(key, value, query, mask, params, head_count):
    """key/value: (B, Sk, D); query: (B, Sq, D); mask: (B, Sq, Sk) int (1 = masked out)."""
    B, Sk, D = key.shape
    Sq = query.shape[1]
    H = head_count
    d = D // H

    wq, bq, wk, bk, wv, bv, wf, bf = params

    # bf16 MXU inputs (accumulation stays f32 inside the kernel) -> halves activation DMA.
    q_bf = query.astype(jnp.bfloat16)
    k_bf = key.astype(jnp.bfloat16)
    v_bf = value.astype(jnp.bfloat16)

    # Precomputed additive mask: -1e18 where masked, 0 elsewhere (bf16 halves mask DMA).
    neg = jnp.where(mask != 0, jnp.float32(-1e18), jnp.float32(0.0)).astype(jnp.bfloat16)

    # Head-major weight blocks so each (b, h) grid step gets dense, full-extent tiles
    # (no in-kernel lane slicing / transposes).
    wq_h = wq.reshape(D, H, d).transpose(1, 0, 2).astype(jnp.bfloat16)   # (H, D, d)
    wk_h = wk.reshape(D, H, d).transpose(1, 0, 2).astype(jnp.bfloat16)
    wv_h = wv.reshape(D, H, d).transpose(1, 0, 2).astype(jnp.bfloat16)
    wf_h = wf.reshape(H, d, D).astype(jnp.bfloat16)                      # (H, d, D)
    bq_h = bq.reshape(H, 1, d).astype(jnp.float32)
    bk_h = bk.reshape(H, 1, d).astype(jnp.float32)
    bv_h = bv.reshape(H, 1, d).astype(jnp.float32)
    bf_2 = bf.reshape(1, D).astype(jnp.float32)

    kernel = functools.partial(_mha_head_kernel, d)

    act_spec = lambda S: pl.BlockSpec((1, S, D), lambda b, h: (b, 0, 0))
    head_w_spec = pl.BlockSpec((1, D, d), lambda b, h: (h, 0, 0))
    head_b_spec = pl.BlockSpec((1, 1, d), lambda b, h: (h, 0, 0))

    # TODO(synk): for long sequences add an Sq tile axis (parallel) and size blocks for
    # 64 MiB VMEM (v7x); toy Sq/Sk fit a single block.
    grid_spec = pltpu.PrefetchScalarGridSpec(
        num_scalar_prefetch=0,
        grid=(B, H),
        in_specs=[
            act_spec(Sq),                                        # query (resident over h)
            act_spec(Sk),                                        # key
            act_spec(Sk),                                        # value
            pl.BlockSpec((1, Sq, Sk), lambda b, h: (b, 0, 0)),   # additive mask
            head_w_spec, head_b_spec,                            # Wq_h, bq_h
            head_w_spec, head_b_spec,                            # Wk_h, bk_h
            head_w_spec, head_b_spec,                            # Wv_h, bv_h
            pl.BlockSpec((1, d, D), lambda b, h: (h, 0, 0)),     # Wf rows for head h
            pl.BlockSpec((1, D), lambda b, h: (0, 0)),           # bf
        ],
        out_specs=[
            pl.BlockSpec((1, Sq, D), lambda b, h: (b, 0, 0)),        # output (acc over h)
            pl.BlockSpec((1, 1, Sq, Sk), lambda b, h: (b, h, 0, 0)), # attention weights
        ],
    )

    out, attn = pl.pallas_call(
        kernel,
        out_shape=(
            jax.ShapeDtypeStruct((B, Sq, D), jnp.float32),
            jax.ShapeDtypeStruct((B, H, Sq, Sk), jnp.float32),
        ),
        grid_spec=grid_spec,
        compiler_params=pltpu.CompilerParams(
            dimension_semantics=("parallel", "arbitrary"),
            vmem_limit_bytes=32 * 1024 * 1024,
        ),
    )(q_bf, k_bf, v_bf, neg, wq_h, bq_h, wk_h, bk_h, wv_h, bv_h, wf_h, bf_2)
    return out, attn


def reference_forward(key, value, query, mask, params, head_count):
    """Pure-JAX f32 reference mirroring the PyTorch module (eval mode)."""
    wq, bq, wk, bk, wv, bv, wf, bf = params
    B, Sk, D = key.shape
    Sq = query.shape[1]
    d = D // head_count

    def shape(x):
        return x.reshape(B, -1, head_count, d).transpose(0, 2, 1, 3)

    Q = shape(query @ wq + bq) / math.sqrt(d)
    K = shape(key @ wk + bk)
    V = shape(value @ wv + bv)

    scores = jnp.einsum('bhqd,bhkd->bhqk', Q, K)
    scores = jnp.where(mask[:, None, :, :] != 0, -1e18, scores)
    attn = jax.nn.softmax(scores, axis=-1)
    ctx = jnp.einsum('bhqk,bhkd->bhqd', attn, V)
    ctx = ctx.transpose(0, 2, 1, 3).reshape(B, Sq, D)
    out = ctx @ wf + bf
    return out, attn


if __name__ == "__main__":
    B, Sq, Sk, D, H = 2, 8, 8, 32, 4

    root = jax.random.PRNGKey(0)
    ks = jax.random.split(root, 12)

    query = jax.random.normal(ks[0], (B, Sq, D), dtype=jnp.float32)
    key = jax.random.normal(ks[1], (B, Sk, D), dtype=jnp.float32)
    value = jax.random.normal(ks[2], (B, Sk, D), dtype=jnp.float32)

    # Binary mask (1 = key position masked out), deterministic "lengths" per batch.
    lens = jnp.array([Sk, Sk - 2], dtype=jnp.int32)
    mask = (jnp.arange(Sk)[None, None, :] >= lens[:, None, None]).astype(jnp.int32)
    mask = jnp.broadcast_to(mask, (B, Sq, Sk))

    scale = 0.1
    params = (
        jax.random.normal(ks[3], (D, D), dtype=jnp.float32) * scale,   # Wq (in, out)
        jax.random.normal(ks[4], (D,), dtype=jnp.float32) * scale,     # bq
        jax.random.normal(ks[5], (D, D), dtype=jnp.float32) * scale,   # Wk
        jax.random.normal(ks[6], (D,), dtype=jnp.float32) * scale,     # bk
        jax.random.normal(ks[7], (D, D), dtype=jnp.float32) * scale,   # Wv
        jax.random.normal(ks[8], (D,), dtype=jnp.float32) * scale,     # bv
        jax.random.normal(ks[9], (D, D), dtype=jnp.float32) * scale,   # Wf (final linear)
        jax.random.normal(ks[10], (D,), dtype=jnp.float32) * scale,    # bf
    )

    out, attn = multi_headed_attention(key, value, query, mask, params, H)
    out, attn = jax.block_until_ready((out, attn))

    out_ref, attn_ref = reference_forward(key, value, query, mask, params, H)
    # Tolerance loosened vs. the f32 reference because the kernel feeds the MXU bf16
    # inputs (with f32 accumulation) and uses an approx reciprocal for the softmax.
    np.testing.assert_allclose(np.asarray(out), np.asarray(out_ref), rtol=5e-2, atol=5e-2)
    np.testing.assert_allclose(np.asarray(attn), np.asarray(attn_ref), rtol=5e-2, atol=5e-2)

    print("KERNEL_OK")
</pallas_src>

<mosaic_0001>
module attributes {stable_mosaic.version = 11 : i64} {
  func.func @_mha_head_kernel(%arg0: i32, %arg1: i32, %arg2: memref<1x8x32xbf16, #tpu.memory_space<vmem>>, %arg3: memref<1x8x32xbf16, #tpu.memory_space<vmem>>, %arg4: memref<1x8x32xbf16, #tpu.memory_space<vmem>>, %arg5: memref<1x8x8xbf16, #tpu.memory_space<vmem>>, %arg6: memref<1x32x8xbf16, #tpu.memory_space<vmem>>, %arg7: memref<1x1x8xf32, #tpu.memory_space<vmem>>, %arg8: memref<1x32x8xbf16, #tpu.memory_space<vmem>>, %arg9: memref<1x1x8xf32, #tpu.memory_space<vmem>>, %arg10: memref<1x32x8xbf16, #tpu.memory_space<vmem>>, %arg11: memref<1x1x8xf32, #tpu.memory_space<vmem>>, %arg12: memref<1x8x32xbf16, #tpu.memory_space<vmem>>, %arg13: memref<1x32xf32, #tpu.memory_space<vmem>>, %arg14: memref<1x8x32xf32, #tpu.memory_space<vmem>>, %arg15: memref<1x1x8x8xf32, #tpu.memory_space<vmem>>) attributes {dimension_semantics = [#tpu.dimension_semantics<parallel>, #tpu.dimension_semantics<arbitrary>], iteration_bounds = array<i64: 2, 4>, scalar_prefetch = 0 : i64, scratch_operands = 0 : i64, tpu.core_type = #tpu.core_type<tc>, window_params = [{transform_indices = @transform_0, window_bounds = array<i64: 1, 8, 32>}, {transform_indices = @transform_1, window_bounds = array<i64: 1, 8, 32>}, {transform_indices = @transform_2, window_bounds = array<i64: 1, 8, 32>}, {transform_indices = @transform_3, window_bounds = array<i64: 1, 8, 8>}, {transform_indices = @transform_4, window_bounds = array<i64: 1, 32, 8>}, {transform_indices = @transform_5, window_bounds = array<i64: 1, 1, 8>}, {transform_indices = @transform_6, window_bounds = array<i64: 1, 32, 8>}, {transform_indices = @transform_7, window_bounds = array<i64: 1, 1, 8>}, {transform_indices = @transform_8, window_bounds = array<i64: 1, 32, 8>}, {transform_indices = @transform_9, window_bounds = array<i64: 1, 1, 8>}, {transform_indices = @transform_10, window_bounds = array<i64: 1, 8, 32>}, {pipeline_mode = #tpu.pipeline_mode<synchronous>, transform_indices = @transform_11, window_bounds = array<i64: 1, 32>}, {transform_indices = @transform_12, window_bounds = array<i64: 1, 8, 32>}, {transform_indices = @transform_13, window_bounds = array<i64: 1, 1, 8, 8>}]} {
    %c0 = arith.constant 0 : index
    %c0_0 = arith.constant 0 : index
    %c0_1 = arith.constant 0 : index
    %0 = vector.load %arg2[%c0, %c0_0, %c0_1] : memref<1x8x32xbf16, #tpu.memory_space<vmem>>, vector<1x8x32xbf16>
    %1 = vector.shape_cast %0 : vector<1x8x32xbf16> to vector<8x32xbf16>
    %c0_2 = arith.constant 0 : index
    %c0_3 = arith.constant 0 : index
    %c0_4 = arith.constant 0 : index
    %2 = vector.load %arg3[%c0_2, %c0_3, %c0_4] : memref<1x8x32xbf16, #tpu.memory_space<vmem>>, vector<1x8x32xbf16>
    %3 = vector.shape_cast %2 : vector<1x8x32xbf16> to vector<8x32xbf16>
    %c0_5 = arith.constant 0 : index
    %c0_6 = arith.constant 0 : index
    %c0_7 = arith.constant 0 : index
    %4 = vector.load %arg4[%c0_5, %c0_6, %c0_7] : memref<1x8x32xbf16, #tpu.memory_space<vmem>>, vector<1x8x32xbf16>
    %5 = vector.shape_cast %4 : vector<1x8x32xbf16> to vector<8x32xbf16>
    %c0_8 = arith.constant 0 : index
    %c0_9 = arith.constant 0 : index
    %c0_10 = arith.constant 0 : index
    %6 = vector.load %arg6[%c0_8, %c0_9, %c0_10] : memref<1x32x8xbf16, #tpu.memory_space<vmem>>, vector<1x32x8xbf16>
    %7 = vector.shape_cast %6 : vector<1x32x8xbf16> to vector<32x8xbf16>
    %cst = arith.constant dense<0.000000e+00> : vector<8x8xf32>
    %8 = tpu.matmul %1, %7, %cst {dimension_numbers = #tpu.dot_dimension_numbers<[1], [0], [0], [1], [0, 0, 1, 1], [], []>} : vector<8x32xbf16>, vector<32x8xbf16>, vector<8x8xf32> -> vector<8x8xf32>
    %c0_11 = arith.constant 0 : index
    %c0_12 = arith.constant 0 : index
    %c0_13 = arith.constant 0 : index
    %9 = vector.load %arg7[%c0_11, %c0_12, %c0_13] : memref<1x1x8xf32, #tpu.memory_space<vmem>>, vector<1x1x8xf32>
    %10 = vector.shape_cast %9 : vector<1x1x8xf32> to vector<1x8xf32>
    %11 = vector.broadcast %10 : vector<1x8xf32> to vector<8x8xf32>
    %12 = arith.addf %8, %11 : vector<8x8xf32>
    %c0_14 = arith.constant 0 : index
    %c0_15 = arith.constant 0 : index
    %c0_16 = arith.constant 0 : index
    %13 = vector.load %arg8[%c0_14, %c0_15, %c0_16] : memref<1x32x8xbf16, #tpu.memory_space<vmem>>, vector<1x32x8xbf16>
    %14 = vector.shape_cast %13 : vector<1x32x8xbf16> to vector<32x8xbf16>
    %cst_17 = arith.constant dense<0.000000e+00> : vector<8x8xf32>
    %15 = tpu.matmul %3, %14, %cst_17 {dimension_numbers = #tpu.dot_dimension_numbers<[1], [0], [0], [1], [0, 0, 1, 1], [], []>} : vector<8x32xbf16>, vector<32x8xbf16>, vector<8x8xf32> -> vector<8x8xf32>
    %c0_18 = arith.constant 0 : index
    %c0_19 = arith.constant 0 : index
    %c0_20 = arith.constant 0 : index
    %16 = vector.load %arg9[%c0_18, %c0_19, %c0_20] : memref<1x1x8xf32, #tpu.memory_space<vmem>>, vector<1x1x8xf32>
    %17 = vector.shape_cast %16 : vector<1x1x8xf32> to vector<1x8xf32>
    %18 = vector.broadcast %17 : vector<1x8xf32> to vector<8x8xf32>
    %19 = arith.addf %15, %18 : vector<8x8xf32>
    %c0_21 = arith.constant 0 : index
    %c0_22 = arith.constant 0 : index
    %c0_23 = arith.constant 0 : index
    %20 = vector.load %arg10[%c0_21, %c0_22, %c0_23] : memref<1x32x8xbf16, #tpu.memory_space<vmem>>, vector<1x32x8xbf16>
    %21 = vector.shape_cast %20 : vector<1x32x8xbf16> to vector<32x8xbf16>
    %cst_24 = arith.constant dense<0.000000e+00> : vector<8x8xf32>
    %22 = tpu.matmul %5, %21, %cst_24 {dimension_numbers = #tpu.dot_dimension_numbers<[1], [0], [0], [1], [0, 0, 1, 1], [], []>} : vector<8x32xbf16>, vector<32x8xbf16>, vector<8x8xf32> -> vector<8x8xf32>
    %c0_25 = arith.constant 0 : index
    %c0_26 = arith.constant 0 : index
    %c0_27 = arith.constant 0 : index
    %23 = vector.load %arg11[%c0_25, %c0_26, %c0_27] : memref<1x1x8xf32, #tpu.memory_space<vmem>>, vector<1x1x8xf32>
    %24 = vector.shape_cast %23 : vector<1x1x8xf32> to vector<1x8xf32>
    %25 = vector.broadcast %24 : vector<1x8xf32> to vector<8x8xf32>
    %26 = arith.addf %22, %25 : vector<8x8xf32>
    %cst_28 = arith.constant 0.353553385 : f32
    %27 = vector.broadcast %cst_28 : f32 to vector<8x8xf32>
    %28 = arith.mulf %12, %27 : vector<8x8xf32>
    %29 = arith.truncf %28 : vector<8x8xf32> to vector<8x8xbf16>
    %30 = arith.truncf %19 : vector<8x8xf32> to vector<8x8xbf16>
    %31 = arith.truncf %26 : vector<8x8xf32> to vector<8x8xbf16>
    %cst_29 = arith.constant dense<0.000000e+00> : vector<8x8xf32>
    %32 = tpu.matmul %29, %30, %cst_29 {dimension_numbers = #tpu.dot_dimension_numbers<[1], [1], [0], [0], [0, 0, 1, 0], [], []>} : vector<8x8xbf16>, vector<8x8xbf16>, vector<8x8xf32> -> vector<8x8xf32>
    %c0_30 = arith.constant 0 : index
    %c0_31 = arith.constant 0 : index
    %c0_32 = arith.constant 0 : index
    %33 = vector.load %arg5[%c0_30, %c0_31, %c0_32] : memref<1x8x8xbf16, #tpu.memory_space<vmem>>, vector<1x8x8xbf16>
    %34 = vector.shape_cast %33 : vector<1x8x8xbf16> to vector<8x8xbf16>
    %35 = arith.extf %34 : vector<8x8xbf16> to vector<8x8xf32>
    %36 = arith.addf %32, %35 : vector<8x8xf32>
    %cst_33 = arith.constant dense<0xFF800000> : vector<8xf32>
    %37 = vector.multi_reduction <maximumf>, %36, %cst_33 [1] : vector<8x8xf32> to vector<8xf32>
    %38 = vector.shape_cast %37 : vector<8xf32> to vector<8x1xf32>
    %39 = vector.broadcast %38 : vector<8x1xf32> to vector<8x8xf32>
    %40 = arith.subf %36, %39 : vector<8x8xf32>
    %41 = math.exp %40 : vector<8x8xf32>
    %cst_34 = arith.constant dense<0.000000e+00> : vector<8xf32>
    %42 = vector.multi_reduction <add>, %41, %cst_34 [1] : vector<8x8xf32> to vector<8xf32>
    %43 = vector.shape_cast %42 : vector<8xf32> to vector<8x1xf32>
    %44 = tpu.reciprocal %43 {approx = true} : vector<8x1xf32> -> vector<8x1xf32>
    %45 = vector.broadcast %44 : vector<8x1xf32> to vector<8x8xf32>
    %46 = arith.mulf %41, %45 : vector<8x8xf32>
    %c0_35 = arith.constant 0 : index
    %c0_36 = arith.constant 0 : index
    %c0_37 = arith.constant 0 : index
    %c0_38 = arith.constant 0 : index
    %47 = vector.load %arg15[%c0_35, %c0_36, %c0_37, %c0_38] : memref<1x1x8x8xf32, #tpu.memory_space<vmem>>, vector<1x1x8x8xf32>
    %48 = vector.shape_cast %47 : vector<1x1x8x8xf32> to vector<8x8xf32>
    %49 = vector.shape_cast %46 : vector<8x8xf32> to vector<1x1x8x8xf32>
    tpu.vector_store %arg15[%c0_35, %c0_36, %c0_37, %c0_38], %49 {strides = array<i32>} : memref<1x1x8x8xf32, #tpu.memory_space<vmem>>, vector<1x1x8x8xf32>,
    %50 = arith.truncf %46 : vector<8x8xf32> to vector<8x8xbf16>
    %cst_39 = arith.constant dense<0.000000e+00> : vector<8x8xf32>
    %51 = tpu.matmul %50, %31, %cst_39 {dimension_numbers = #tpu.dot_dimension_numbers<[1], [0], [0], [1], [0, 0, 1, 1], [], []>} : vector<8x8xbf16>, vector<8x8xbf16>, vector<8x8xf32> -> vector<8x8xf32>
    %52 = arith.truncf %51 : vector<8x8xf32> to vector<8x8xbf16>
    %c0_40 = arith.constant 0 : index
    %c0_41 = arith.constant 0 : index
    %c0_42 = arith.constant 0 : index
    %53 = vector.load %arg12[%c0_40, %c0_41, %c0_42] : memref<1x8x32xbf16, #tpu.memory_space<vmem>>, vector<1x8x32xbf16>
    %54 = vector.shape_cast %53 : vector<1x8x32xbf16> to vector<8x32xbf16>
    %cst_43 = arith.constant dense<0.000000e+00> : vector<8x32xf32>
    %55 = tpu.matmul %52, %54, %cst_43 {dimension_numbers = #tpu.dot_dimension_numbers<[1], [0], [0], [1], [0, 0, 1, 1], [], []>} : vector<8x8xbf16>, vector<8x32xbf16>, vector<8x32xf32> -> vector<8x32xf32>
    %c0_i32 = arith.constant 0 : i32
    %56 = arith.cmpi eq, %arg1, %c0_i32 : i32
    %57 = arith.extui %56 : i1 to i32
    %c0_i32_44 = arith.constant 0 : i32
    %58 = arith.cmpi ne, %57, %c0_i32_44 : i32
    scf.if %58 {
      %c0_51 = arith.constant 0 : index
      %c0_52 = arith.constant 0 : index
      %65 = vector.load %arg13[%c0_51, %c0_52] : memref<1x32xf32, #tpu.memory_space<vmem>>, vector<1x32xf32>
      %66 = vector.shape_cast %65 : vector<1x32xf32> to vector<1x32xf32>
      %67 = vector.broadcast %66 : vector<1x32xf32> to vector<8x32xf32>
      %c0_53 = arith.constant 0 : index
      %c0_54 = arith.constant 0 : index
      %c0_55 = arith.constant 0 : index
      %68 = vector.load %arg14[%c0_53, %c0_54, %c0_55] : memref<1x8x32xf32, #tpu.memory_space<vmem>>, vector<1x8x32xf32>
      %69 = vector.shape_cast %68 : vector<1x8x32xf32> to vector<8x32xf32>
      %70 = vector.shape_cast %67 : vector<8x32xf32> to vector<1x8x32xf32>
      tpu.vector_store %arg14[%c0_53, %c0_54, %c0_55], %70 {strides = array<i32>} : memref<1x8x32xf32, #tpu.memory_space<vmem>>, vector<1x8x32xf32>,
    } else {
    }
    %c0_45 = arith.constant 0 : index
    %c0_46 = arith.constant 0 : index
    %c0_47 = arith.constant 0 : index
    %59 = vector.load %arg14[%c0_45, %c0_46, %c0_47] : memref<1x8x32xf32, #tpu.memory_space<vmem>>, vector<1x8x32xf32>
    %60 = vector.shape_cast %59 : vector<1x8x32xf32> to vector<8x32xf32>
    %61 = arith.addf %60, %55 : vector<8x32xf32>
    %c0_48 = arith.constant 0 : index
    %c0_49 = arith.constant 0 : index
    %c0_50 = arith.constant 0 : index
    %62 = vector.load %arg14[%c0_48, %c0_49, %c0_50] : memref<1x8x32xf32, #tpu.memory_space<vmem>>, vector<1x8x32xf32>
    %63 = vector.shape_cast %62 : vector<1x8x32xf32> to vector<8x32xf32>
    %64 = vector.shape_cast %61 : vector<8x32xf32> to vector<1x8x32xf32>
    tpu.vector_store %arg14[%c0_48, %c0_49, %c0_50], %64 {strides = array<i32>} : memref<1x8x32xf32, #tpu.memory_space<vmem>>, vector<1x8x32xf32>,
    return
  }
  func.func @transform_0(%arg0: i32, %arg1: i32) -> (i32, i32, i32) {
    %c0_i32 = arith.constant 0 : i32
    %c0_i32_0 = arith.constant 0 : i32
    %c0_i32_1 = arith.constant 0 : i32
    return %arg0, %c0_i32, %c0_i32_0 : i32, i32, i32
  }
  func.func @transform_1(%arg0: i32, %arg1: i32) -> (i32, i32, i32) {
    %c0_i32 = arith.constant 0 : i32
    %c0_i32_0 = arith.constant 0 : i32
    %c0_i32_1 = arith.constant 0 : i32
    return %arg0, %c0_i32, %c0_i32_0 : i32, i32, i32
  }
  func.func @transform_2(%arg0: i32, %arg1: i32) -> (i32, i32, i32) {
    %c0_i32 = arith.constant 0 : i32
    %c0_i32_0 = arith.constant 0 : i32
    %c0_i32_1 = arith.constant 0 : i32
    return %arg0, %c0_i32, %c0_i32_0 : i32, i32, i32
  }
  func.func @transform_3(%arg0: i32, %arg1: i32) -> (i32, i32, i32) {
    %c0_i32 = arith.constant 0 : i32
    %c0_i32_0 = arith.constant 0 : i32
    %c0_i32_1 = arith.constant 0 : i32
    return %arg0, %c0_i32, %c0_i32_0 : i32, i32, i32
  }
  func.func @transform_4(%arg0: i32, %arg1: i32) -> (i32, i32, i32) {
    %c0_i32 = arith.constant 0 : i32
    %c0_i32_0 = arith.constant 0 : i32
    %c0_i32_1 = arith.constant 0 : i32
    return %arg1, %c0_i32, %c0_i32_0 : i32, i32, i32
  }
  func.func @transform_5(%arg0: i32, %arg1: i32) -> (i32, i32, i32) {
    %c0_i32 = arith.constant 0 : i32
    %c0_i32_0 = arith.constant 0 : i32
    %c0_i32_1 = arith.constant 0 : i32
    return %arg1, %c0_i32, %c0_i32_0 : i32, i32, i32
  }
  func.func @transform_6(%arg0: i32, %arg1: i32) -> (i32, i32, i32) {
    %c0_i32 = arith.constant 0 : i32
    %c0_i32_0 = arith.constant 0 : i32
    %c0_i32_1 = arith.constant 0 : i32
    return %arg1, %c0_i32, %c0_i32_0 : i32, i32, i32
  }
  func.func @transform_7(%arg0: i32, %arg1: i32) -> (i32, i32, i32) {
    %c0_i32 = arith.constant 0 : i32
    %c0_i32_0 = arith.constant 0 : i32
    %c0_i32_1 = arith.constant 0 : i32
    return %arg1, %c0_i32, %c0_i32_0 : i32, i32, i32
  }
  func.func @transform_8(%arg0: i32, %arg1: i32) -> (i32, i32, i32) {
    %c0_i32 = arith.constant 0 : i32
    %c0_i32_0 = arith.constant 0 : i32
    %c0_i32_1 = arith.constant 0 : i32
    return %arg1, %c0_i32, %c0_i32_0 : i32, i32, i32
  }
  func.func @transform_9(%arg0: i32, %arg1: i32) -> (i32, i32, i32) {
    %c0_i32 = arith.constant 0 : i32
    %c0_i32_0 = arith.constant 0 : i32
    %c0_i32_1 = arith.constant 0 : i32
    return %arg1, %c0_i32, %c0_i32_0 : i32, i32, i32
  }
  func.func @transform_10(%arg0: i32, %arg1: i32) -> (i32, i32, i32) {
    %c0_i32 = arith.constant 0 : i32
    %c0_i32_0 = arith.constant 0 : i32
    %c0_i32_1 = arith.constant 0 : i32
    return %arg1, %c0_i32, %c0_i32_0 : i32, i32, i32
  }
  func.func @transform_11(%arg0: i32, %arg1: i32) -> (i32, i32) {
    %c0_i32 = arith.constant 0 : i32
    %c0_i32_0 = arith.constant 0 : i32
    %c0_i32_1 = arith.constant 0 : i32
    return %c0_i32, %c0_i32_0 : i32, i32
  }
  func.func @transform_12(%arg0: i32, %arg1: i32) -> (i32, i32, i32) {
    %c0_i32 = arith.constant 0 : i32
    %c0_i32_0 = arith.constant 0 : i32
    %c0_i32_1 = arith.constant 0 : i32
    return %arg0, %c0_i32, %c0_i32_0 : i32, i32, i32
  }
  func.func @transform_13(%arg0: i32, %arg1: i32) -> (i32, i32, i32, i32) {
    %c0_i32 = arith.constant 0 : i32
    %c0_i32_0 = arith.constant 0 : i32
    %c0_i32_1 = arith.constant 0 : i32
    return %arg0, %arg1, %c0_i32, %c0_i32_0 : i32, i32, i32, i32
  }
}

</mosaic_0001>

<bundles_post_ra>
// kernel: tpu_custom_call.1
= control target key start
LH: loop header
LB: loop body
LE: loop exit
PB: predicated region body
PF: predicated region fallthrough
CT: control target
= control target key end

     0   :  { %s2021_s0 = inlined_call_operand.vmem [shape: bf16[2,8,32], index: 0, kind: input, shape index: {}]   ;;  %s2022_s1 = inlined_call_operand.vmem [shape: bf16[2,8,32], index: 1, kind: input, shape index: {}]   ;;  %s2023_s2 = inlined_call_operand.vmem [shape: bf16[2,8,32], index: 2, kind: input, shape index: {}]   ;;  %s2024_s3 = inlined_call_operand.vmem [shape: bf16[2,8,8], index: 3, kind: input, shape index: {}]   ;;  %s2025_s4 = inlined_call_operand.vmem [shape: bf16[4,32,8], index: 4, kind: input, shape index: {}]   ;;  %s2026_s5 = inlined_call_operand.vmem [shape: f32[4,1,8], index: 5, kind: input, shape index: {}]   ;;  %s2027_s6 = inlined_call_operand.vmem [shape: bf16[4,32,8], index: 6, kind: input, shape index: {}]   ;;  %s2028_s7 = inlined_call_operand.vmem [shape: f32[4,1,8], index: 7, kind: input, shape index: {}]   ;;  %s2029_s8 = inlined_call_operand.vmem [shape: bf16[4,32,8], index: 8, kind: input, shape index: {}]   ;;  %s2030_s9 = inlined_call_operand.vmem [shape: f32[4,1,8], index: 9, kind: input, shape index: {}]   ;;  %s2031_s10 = inlined_call_operand.vmem [shape: bf16[4,8,32], index: 10, kind: input, shape index: {}]   ;;  %s2032_s11 = inlined_call_operand.vmem [shape: f32[1,32], index: 11, kind: input, shape index: {}]   ;;  %s2033_s12 = inlined_call_operand.hbm [shape: f32[2,8,32], index: 12, kind: output, shape index: {0}]   ;;  %s2034_s13 = inlined_call_operand.hbm [shape: f32[2,4,8,8], index: 13, kind: output, shape index: {1}]  }
   0x1   :  { %2049 = sst [smem:[#allocation19_spill]] %s2021_s0 }
   0x2   :  { %2050 = sst [smem:[#allocation20_spill]] %s2022_s1 }
   0x3   :  { %2051 = sst [smem:[#allocation21_spill]] %s2030_s9 }
   0x4   :  { %2052 = sst [smem:[#allocation22_spill]] %s2031_s10 }
   0x5   :  { %2053 = sst [smem:[#allocation23_spill]] %s2032_s11 }
   0x6   :  { %2054 = sst [smem:[#allocation24_spill]] %s2033_s12 }
   0x7   :  { %2055 = sst [smem:[#allocation25_spill]] %s2034_s13 }
   0x8   :  { %19 = vsyncpa [#allocation3], 0 }
   0x9   :  { %21 = vsyncpa [#allocation3 + $0x1], 0 }
   0xa   :  { %22 = vsyncpa [#allocation5], 0 }
   0xb   :  { %24 = vsyncpa [#allocation5 + $0x1], 0  ;;  %s1699_s25 = smov 0   ;;  %s1701_s26 = smov 0  }
   0xc   :  { %s1703_s27 = smov 0   ;;  %s1705_s28 = smov 0  }
   0xd   :  { %s1707_s29 = smov 0   ;;  %s1709_s30 = smov 0  }
   0xe   :  { %s1711_s14 = smov 0   ;;  %s1713_s15 = smov 0  }
   0xf   :  { %s1715_s16 = smov 0   ;;  %s1717_s17 = smov 0  }
  0x10   :  { %s1719_s18 = smov 0  }
  0x11 LB: > { %2056 = sst [smem:[#allocation8_spill]] %s1591_s27  ;;  %s1259_s19 = sadd.s32 4294967295, %s1623_s18   ;;  %s1623_s18 = sphi %s1719_s18, %s30_s18   ;;  %s1619_s17 = sphi %s1717_s17, %s2095_s17   ;;  %s1615_s16 = sphi %s1715_s16, %s2094_s16   ;;  %s1611_s15 = sphi %s1713_s15, %s2093_s15   ;;  %s1607_s14 = sphi %s1711_s14, %s2092_s14   ;;  %s1603_s30 = sphi %s1709_s30, %s2091_s30   ;;  %s1599_s29 = sphi %s1707_s29, %s2099_s29   ;;  %s1595_s28 = sphi %s1705_s28, %s2098_s28   ;;  %s1591_s27 = sphi %s1703_s27, %s2089_s27   ;;  %s1587_s26 = sphi %s1701_s26, %s2097_s26   ;;  %s1583_s25 = sphi %s1699_s25, %s2096_s25  }
  0x12   : > { %2057 = sst [smem:[#allocation9_spill]] %s1595_s28  ;;  %s1260_s20 = sadd.s32 4294967294, %s1623_s18  }
  0x13   : > { %2058 = sst [smem:[#allocation10_spill]] %s1603_s30  ;;  %s39_s21 = sadd.s32 1, %s1615_s16 }
  0x14   : > { %2059 = sst [smem:[#allocation11_spill]] %s1615_s16  ;;  %s42_s22 = sadd.s32 1, %s1619_s17 }
  0x15   : > { %2060 = sst [smem:[#allocation12_spill]] %s1619_s17  ;;  %p40_p0 = scmp.ge.s32.totalorder %s39_s21, 4 }
  0x16   : > { %s356_s23 = sadd.s32 1, %s1603_s30  ;;  %p366_p1 = scmp.ne.s32.totalorder %s1603_s30, %s1599_s29 }
  0x17   : > { %p1761_p2 = scmp.eq.s32.totalorder %s1259_s19, 7  ;;  %s2101_s21 = smov (%p40_p0, %s39_s21), 0 }
  0x18   : > { %2062 = sst [smem:[#allocation13_spill]] %s2101_s21  ;;  %s2103_s22 = smov (!%p40_p0, %s42_s22), %s1619_s17 }
  0x19   : > { %p1770_p3 = por %p1761_p2, %p366_p1  ;;  %p372_p4 = scmp.ne.s32.totalorder %s1599_s29, %s1595_s28 }
  0x1a   : > { %p44_p5 = scmp.ge.s32.totalorder %s2103_s22, 2  ;;  %p1776_p6 = scmp.eq.s32.totalorder %s1260_s20, 7 }
  0x1b   : > { %s2063_s13 = scalar_select %p1770_p3, 1, 0 }
  0x1c   : > { %s380_s12 = ssub.s32 %s1615_s16, %s2101_s21  ;;  %s384_s11 = sadd.s32 1, %s1591_s27 }
  0x1d   : > { %2064 = sst [smem:[#allocation14_spill]] %s2063_s13  ;;  %s2105_s22 = smov (%p44_p5, %s2103_s22), 0 }
  0x1e   : > { %2066 = sst [smem:[#allocation15_spill]] %s2105_s22  ;;  %p1787_p7 = por %p1776_p6, %p372_p4 }
  0x1f   : > { %p394_p8 = scmp.ne.s32.totalorder %s1591_s27, %s1587_s26  ;;  %s353_s28 = ssub.s32 %s1619_s17, %s2105_s22 }
  0x20   : > { %p400_p9 = scmp.ne.s32.totalorder %s1587_s26, %s1583_s25  ;;  %p354_p10 = scmp.eq.s32.totalorder %s353_s28, 0 }
  0x21   : > { %s381_s20 = sor.u32 %s380_s12, %s353_s28  ;;  %p1799_p12 = por %p394_p8, %p1761_p2 }
  0x22   : > { %p382_p11 = scmp.eq.s32.totalorder %s381_s20, 0  ;;  %p1811_p13 = por %p400_p9, %p1776_p6 }
  0x23   : > { %s1804_s21 = scalar_select %p354_p10, %s1603_s30, %s356_s23  }
  0x24   : > { %s1807_s16 = scalar_select %p382_p11, %s1591_s27, %s384_s11  }
  0x25   : > { %2069 = sst [smem:[#allocation16_spill]] %s1804_s21  ;;  %p1263_p0 = scmp.ge.s32.totalorder %s1623_s18, 1 }
  0x26   : > { %2070 = sst [smem:[#allocation17_spill]] %s1807_s16  ;;  %p499_p1 = scmp.lt.s32.totalorder %s1623_s18, 9 }
  0x27   : > { %s2071_s9 = scalar_select %p1811_p13, 1, 0 }
  0x28   : > { %p500_p4 = pnand %p1263_p0, %p499_p1 }
  0x29   : > { %2072 = sst [smem:[#allocation18_spill]] %s2071_s9  ;;  %p603_p2 = scmp.lt.s32.totalorder (!%p500_p4), %s1607_s14, 3  ;;  %v1625_v0 = vmov (!%p500_p4), 0.0   ;;  %vm1626_vm0 = vmmov (!%p500_p4), 0   ;;  %vm658_vm1 = vcmask (!%p500_p4), 261120   ;;  %vm840_vm2 = vcmask (!%p500_p4), 64512  }
  0x2a   : > { %503 = sbr.rel (%p500_p4) target bundleno = 1298 (0x512), region = 68  ;;  %s2042_s12 = sand.u32 (!%p500_p4), 1, %s1599_s29   ;;  %1327 = vmatprep.subr.bf16.mxu1 (!%p500_p4), %v1625_v0  ;;  %1319 = vmatprep.subr.bf16.mxu0 (!%p500_p4), %v1625_v0  ;;  %vm903_vm3 = vcmask (!%p500_p4), 1043456  }
  0x2b   : > { %s1822_s11 = sshll.u32 (!%p500_p4), %s2042_s12, 3  ;;  %1331 = vmatprep.mubr.msk.bf16.mxu1 (!%p500_p4), %vm1626_vm0, %v1625_v0  ;;  %1323 = vmatprep.mubr.msk.bf16.mxu0 (!%p500_p4), %vm1626_vm0, %v1625_v0  ;;  %p587_p5 = scmp.lt.s32.totalorder (!%p500_p4), %s1611_s15, 1 }
  0x2c   : > { %s2073_s1 = sld [smem:[#allocation20_spill]] (!%p500_p4)  ;;  %s2074_s0 = sld [smem:[#allocation19_spill]] (!%p500_p4) }
  0x2d   : > { %s2076_s19 = sld [smem:[#allocation22_spill]] (!%p500_p4)  ;;  %p1292_p6 = scmp.ne.s32.totalorder (!%p500_p4), %s1607_s14, 0 }
  0x31   : > { %s1826_s28 = scalar_select %p603_p2, %s1607_s14, 3 }
  0x32   : > { %s588_s21 = scalar_select %p587_p5, %s1611_s15, 1 }
  0x33   : > { %s1301_s23 = sshll.u32 %s1826_s28, 4  ;;  %s610_s12 = scalar_lea.vmem %s2026_s5, %s1826_s28 }
  0x34   : > { %s615_s20 = scalar_lea.vmem %s2027_s6, %s1301_s23  ;;  %s607_s17 = scalar_lea.vmem %s2025_s4, %s1301_s23  ;;  %v1277_v8 = vld [vmem:[%s610_s12] ss:$0 sm:$0xff] }
  0x35   : > { %v1463_v1 = vld [vmem:[%s615_s20] sm:$0xff]   ;;  %v1465_v3 = vld [vmem:[%s615_s20 + $0x8] sm:$0xff]   ;;  %s1844_s27 = scalar_lea.vmem %s2029_s8, %s1301_s23  ;;  %s1847_s9 = sshll.u32 %s588_s21, 2 }
  0x36   : > { %v1464_v2 = vld [vmem:[%s607_s17] sm:$0xff]   ;;  %1328 = vmatpush3.bf16.msra.mxu1 %v1463_v1  ;;  %v1466_v4 = vld [vmem:[%s607_s17 + $0x8] sm:$0xff]   ;;  %s594_s24 = scalar_lea.vmem %s2073_s1, %s1847_s9  ;;  %s590_s16 = scalar_lea.vmem %s2074_s0, %s1847_s9 }
  0x37   : > { %1329 = vmatprep.subr.bf16.mxu1 %v1625_v0  ;;  %1320 = vmatpush3.bf16.msra.mxu0 %v1464_v2  ;;  %v633_v5 = vld [vmem:[%s594_s24] sm:$0xf]  ;;  %s618_s23 = scalar_lea.vmem %s2028_s7, %s1826_s28  ;;  %v1468_v24 = vld [vmem:[%s1844_s27 + $0x8] sm:$0xff]   ;;  %s598_s30 = scalar_lea.vmem %s2023_s2, %s1847_s9 }
  0x38   : > { %1321 = vmatprep.subr.bf16.mxu0 %v1625_v0  ;;  %v632_v6 = vld [vmem:[%s590_s16] sm:$0xf]  ;;  %s602_s21 = scalar_lea.vmem %s2024_s3, %s1847_s9  ;;  %s1276_s22 = sshll.u32 %s1826_s28, 2 }
  0x39   : > { %v1281_v7 = vld [vmem:[%s618_s23] ss:$0 sm:$0xff]  ;;  %s2075_s23 = sld [smem:[#allocation21_spill]]  ;;  %s2048_s16 = sand.u32 1, %s1587_s26  }
  0x3a   : > { %1330 = vmatpush3.bf16.msra.mxu1 %v1465_v3  ;;  %v1467_v23 = vld [vmem:[%s1844_s27] sm:$0xff]   ;;  %s1907_s17 = sshll.u32 %s2048_s16, 3 }
  0x3b   : > { %1322 = vmatpush3.bf16.msra.mxu0 %v1466_v4  ;;  %1343 = vmatprep.subr.bf16.mxu1 %v1625_v0  ;;  %v634_v25 = vld [vmem:[%s598_s30] sm:$0xf]  ;;  %s630_s30 = scalar_lea.vmem %s2076_s19, %s1276_s22 }
  0x3c   : > { %1335 = vmatprep.subr.bf16.mxu0 %v1625_v0  ;;  %v838_v26 = vld [vmem:[%s602_s21] sm:$0xf]  ;;  %s586_s21 = scalar_lea.vmem [#allocation4], %s1907_s17 }
  0x3d   : > { %1332 = vmatmul.mubr.msk.bf16.vlgmr.msra.gmra.mrb[0].mxu1 %vm658_vm1, %v633_v5  ;;  %v839_v27 = vunpack.c.l.bf16 %v838_v26  ;;  %v948_v47 = vld [vmem:[%s630_s30] sm:$0xf] }
  0x3e   : > { %1324 = vmatmul.mubr.msk.bf16.vlgmr.msra.gmra.mrb[0].mxu0 %vm658_vm1, %v632_v6  ;;  %1345 = vmatprep.mubr.msk.bf16.mxu1 %vm1626_vm0, %v1625_v0  ;;  %v953_v48 = vsel %vm903_vm3, %v948_v47, 0 }
  0x3f   : > { %1339 = vmatprep.mubr.msk.bf16.mxu0 %vm1626_vm0, %v1625_v0  ;;  %1336 = vmatpush3.bf16.msra.mxu0 %v1467_v23  ;;  %s626_s20 = scalar_lea.vmem %s2075_s23, %s1826_s28  ;;  %s579_s28 = scalar_lea.vmem [#allocation2], %s1822_s11 }
  0x40   : > { %1337 = vmatprep.subr.bf16.mxu0 %v1625_v0  ;;  %v1285_v42 = vld [vmem:[%s626_s20] ss:$0 sm:$0xff]  ;;  %s2077_s23 = sld [smem:[#allocation23_spill]] (!%p1292_p6) }
  0x43   : > { %1338 = vmatpush3.bf16.msra.mxu0 %v1468_v24 }
  0x44   : > { %1349 = vmatprep.subr.bf16.mxu0 %v1625_v0 }
  0x46   : > { %1340 = vmatmul.mubr.msk.bf16.vlgmr.msra.gmra.mrb[4].mxu0 %vm658_vm1, %v634_v25  ;;  %v1293_v62 = vld [vmem:[%s2077_s23] ss:$0 sm:$0xff] (!%p1292_p6) }
  0x47   : > { %1351 = vmatprep.mubr.msk.bf16.mxu0 %vm1626_vm0, %v1625_v0  ;;  %1006 = vst.msk [vmem:[%s579_s28] sm:$0xff] (!%p1292_p6), %vm658_vm1, %v1293_v62 }
 0x110   : > { %v762_v9 = vpop.f32.mrb[0].mxu1 }
 0x111   : > { %v763_v10 = vadd.f32 %v1281_v7, %v762_v9  ;;  %v1333_v11 = vpop.f32.mrb[1].mxu1  ;;  %v696_v12 = vpop.f32.mrb[0].mxu0 }
 0x112   : > { %v765_v13 = vpop.f32.mrb[2].mxu1  ;;  %v697_v14 = vadd.f32 %v1277_v8, %v696_v12  ;;  %v1325_v15 = vpop.f32.mrb[1].mxu0 }
 0x113   : > { %v836_v16 = vpack.c.bf16 %v763_v10, %v763_v10  ;;  %v1334_v17 = vpop.f32.mrb[3].mxu1  ;;  %v699_v18 = vpop.f32.mrb[2].mxu0 }
 0x114   : > { %v1326_v19 = vpop.f32.mrb[3].mxu0  ;;  %v834_v21 = vmul.f32 0.35355338, %v697_v14 }
 0x115   : > { %v845_v20 = vsel %vm840_vm2, %v836_v16, 0 }
 0x116   : > { %1344 = vmatpush3.bf16.xpose.msra.mxu1 %v845_v20  ;;  %v835_v22 = vpack.c.bf16 %v834_v21, %v834_v21 }
 0x117   : > { %1355 = vmatprep.subr.bf16.mxu1 %v1625_v0 }
 0x119   : > { %v828_v39 = vpop.f32.mrb[4].mxu0 }
 0x11a   : > { %v1341_v40 = vpop.f32.mrb[5].mxu0  ;;  %v829_v44 = vadd.f32 %v1285_v42, %v828_v39 }
 0x11b   : > { %v831_v41 = vpop.f32.mrb[6].mxu0 }
 0x11c   : > { %v1342_v43 = vpop.f32.mrb[7].mxu0  ;;  %v837_v45 = vpack.c.bf16 %v829_v44, %v829_v44 }
 0x11d   : > { %1346 = vmatmul.mubr.msk.bf16.vlgmr.msra.gmra.mrb[4].mxu1 %vm840_vm2, %v835_v22 }
 0x11e   : > { %1357 = vmatprep.mubr.msk.bf16.mxu1 %vm1626_vm0, %v1625_v0  ;;  %v905_v46 = vsel %vm903_vm3, %v837_v45, 0  ;;  %1356 = vmatpush3.bf16.msra.mxu1 %v953_v48 }
 0x11f   : > { %1350 = vmatpush3.bf16.msra.mxu0 %v905_v46 }
 0x1f0   : > { %v881_v28 = vpop.f32.mrb[4].mxu1 }
 0x1f1   : > { %v882_v29 = vadd.f32 %v881_v28, %v839_v27  ;;  %v1347_v30 = vpop.f32.mrb[5].mxu1 }
 0x1f2   : > { %v884_v31 = vpop.f32.mrb[6].mxu1 }
 0x1f3   : > { %v1348_v32 = vpop.f32.mrb[7].mxu1  ;;  %v887_v33 = vsel %vm840_vm2, %v882_v29, -inf }
 0x1f4   : > { %888 = vmax.xlane.f32.xlu0 %v887_v33 }
 0x281   : > { %v889_v34 = vpop.xlane.xlu0 %888 }
 0x282   : > { %v890_v35 = vsub.f32 %v882_v29, %v889_v34 }
 0x284   : > { %v891_v36 = vmul.f32 1.442695, %v890_v35 }
 0x286   : > { %1469 = vpow2.f32 %v891_v36 }
 0x290   : > { %v1470_v37 = vpop.eup %1469 }
 0x291   : > { %v893_v38 = vsel %vm840_vm2, %v1470_v37, 0.0 }
 0x292   : > { %894 = vadd.xlane.f32.xlu0 %v893_v38 }
 0x31f   : > { %v895_v49 = vpop.xlane.xlu0 %894 }
 0x320   : > { %1471 = vrcp.f32 %v895_v49 }
 0x32a   : > { %v1472_v50 = vpop.eup %1471 }
 0x32b   : > { %v897_v51 = vmul.f32 %v1472_v50, %v1470_v37 }
 0x32d   : > { %898 = vst.msk [vmem:[%s586_s21] sm:$0xff] %vm840_vm2, %v897_v51  ;;  %v899_v52 = vpack.c.bf16 %v897_v51, %v897_v51 }
 0x32f   : > { %1352 = vmatmul.mubr.msk.bf16.vlgmr.msra.gmra.mrb[8].mxu0 %vm840_vm2, %v899_v52 }
 0x402   : > { %v941_v53 = vpop.f32.mrb[8].mxu0 }
 0x403   : > { %v947_v54 = vpack.c.bf16 %v941_v53, %v941_v53  ;;  %v1353_v55 = vpop.f32.mrb[9].mxu0 }
 0x404   : > { %v944_v56 = vpop.f32.mrb[10].mxu0 }
 0x405   : > { %v1354_v57 = vpop.f32.mrb[11].mxu0  ;;  %1358 = vmatmul.mubr.msk.bf16.vlgmr.msra.gmra.mrb[8].mxu1 %vm840_vm2, %v947_v54 }
 0x4d5   : > { %998 = sbr.rel (%p1292_p6) target bundleno = 1244 (0x4dc), region = 72 }
 0x4d8   : > { %v989_v58 = vpop.f32.mrb[8].mxu1 }
 0x4d9   : > { %v1359_v59 = vpop.f32.mrb[9].mxu1 }
 0x4da   : > { %v992_v60 = vpop.f32.mrb[10].mxu1 }
 0x4db   : > { %v1360_v61 = vpop.f32.mrb[11].mxu1 }
 0x4dc PF: > { %v1007_v63 = vld [vmem:[%s579_s28] sm:$0xff]  ;;  %s1296_s22 = sshll.u32 %s1611_s15, 7  ;;  %s2079_s11 = sld [smem:[#allocation24_spill]] }
 0x4dd   : > { %v1008_v0 = vadd.f32 %v1007_v63, %v989_v58  ;;  %s1029_s30 = sshll.u32 %s579_s28, 4  ;;  %s1929_s9 = sshll.u32 %s586_s21, 4  ;;  %s1925_s30 = int_to_ptr.vmem [resolvable:$true] %s1029_s30  ;;  %s1958_s9 = int_to_ptr.vmem [resolvable:$true] %s1929_s9 }
 0x4de   : > { %s2080_s27 = sand.u32 1, %s1599_s29   ;;  %s1473_s16 = scalar_lea.vmem %s1925_s30, 128 }
 0x4df   : > { %1009 = vst.msk [vmem:[%s579_s28] sm:$0xff] %vm658_vm1, %v1008_v0  ;;  %s1011_s23 = scalar_lea.sflag [#allocation3], %s2080_s27  ;;  %p1474_p8 = scmp.ne.s32.totalorder %s1925_s30, %s1473_s16 }
 0x4e1   : > { %p1475_p9 = pnand %p1474_p8, %p1770_p3 }
 0x4e2   : > { %s1923_s19 = scalar_lea.hbm %s2079_s11, %s1296_s22  ;;  %s1627_s22 = smov [#allocation2]  }
 0x4e3   : > { %p1476_p10 = pneg %p1475_p9  ;;  %s1477_s12 = sshll.u32 %s1627_s22, 4  ;;  %s1478_s12 = int_to_ptr.vmem [resolvable:$false] %s1477_s12 }
 0x4e4   : > { %s1479_s24 = scalar_lea.vmem %s1478_s12, 256  ;;  %p1480_p11 = scmp.lt.s32.totalorder %s1925_s30, %s1478_s12 }
 0x4e5   : > { %p1481_p0 = scmp.lt.s32.totalorder %s1479_s24, %s1473_s16 }
 0x4e7   : > { %p1482_p1 = por %p1481_p0, %p1480_p11 }
 0x4e9   : > { %p1483_p4 = pnand %p1482_p1, %p1476_p10 }
 0x4eb   : > { %1486 = shalt.err (!%p1483_p4)
}
 0x4ec   : > { %s1487_s21 = scalar_lea.hbm %s1923_s19, 128  ;;  %s1491_s22 = scalar_lea.hbm %s2079_s11, 256 }
 0x4ed   : > { %p1488_p2 = scmp.ne.s32.totalorder %s1923_s19, %s1487_s21  ;;  %p1492_p8 = scmp.lt.u32.totalorder %s1923_s19, %s2079_s11 }
 0x4ee   : > { %p1493_p9 = scmp.lt.u32.totalorder %s1491_s22, %s1487_s21  ;;  %p1495_p11 = scmp.lt.u32.totalorder %s1487_s21, %s1923_s19 }
 0x4ef   : > { %p1489_p5 = pnand %p1488_p2, %p1770_p3 }
 0x4f0   : > { %p1494_p10 = por %p1493_p9, %p1492_p8 }
 0x4f1   : > { %p1490_p6 = pneg %p1489_p5 }
 0x4f2   : > { %p1496_p0 = por %p1495_p11, %p1494_p10 }
 0x4f4   : > { %p1497_p1 = pnand %p1496_p0, %p1490_p6 }
 0x4f6   : > { %1500 = shalt.err (!%p1497_p1)
}
 0x4f7   : > { %1361 = dma.vmem_to_hbm [thread:$0]  (%p1770_p3), %s1925_s30, 128, %s1923_s19, %s1011_s23  }
 0x4f8   : > { %s2081_s16 = sshll.u32 %s1611_s15, 2  ;;  %s2082_s27 = sld [smem:[#allocation25_spill]] }
 0x4f9   : > { %s1040_s24 = sadd.s32 %s1607_s14, %s2081_s16  ;;  %s2084_s12 = sand.u32 1, %s1587_s26  }
 0x4fa   : > { %s1298_s17 = sshll.u32 %s1040_s24, 7  ;;  %s1016_s0 = scalar_lea.sflag [#allocation5], %s2084_s12 }
 0x4fb   : > { %s1501_s1 = scalar_lea.vmem %s1958_s9, 128  ;;  %s1628_s19 = smov [#allocation4]  }
 0x4fc   : > { %p1502_p4 = scmp.ne.s32.totalorder %s1958_s9, %s1501_s1  ;;  %s1505_s15 = sshll.u32 %s1628_s19, 4  ;;  %s1506_s15 = int_to_ptr.vmem [resolvable:$false] %s1505_s15 }
 0x4fd   : > { %s1507_s14 = scalar_lea.vmem %s1506_s15, 256  ;;  %p1508_p3 = scmp.lt.s32.totalorder %s1958_s9, %s1506_s15 }
 0x4fe   : > { %s2083_s22 = smov %s2082_s27  ;;  %s1042_s20 = scalar_lea.hbm %s2082_s27, %s1298_s17 }
 0x4ff   : > { %p1503_p2 = pnand %p1502_p4, %p1799_p12  ;;  %p1509_p6 = scmp.lt.s32.totalorder %s1507_s14, %s1501_s1 }
 0x501   : > { %p1504_p5 = pneg %p1503_p2  ;;  %p1510_p8 = por %p1509_p6, %p1508_p3 }
 0x503   : > { %p1511_p9 = pnand %p1510_p8, %p1504_p5 }
 0x505   : > { %1514 = shalt.err (!%p1511_p9)
}
 0x506   : > { %s1515_s30 = scalar_lea.hbm %s1042_s20, 128  ;;  %s1519_s24 = scalar_lea.hbm %s2083_s22, 1024 }
 0x507   : > { %p1516_p10 = scmp.ne.s32.totalorder %s1042_s20, %s1515_s30  ;;  %p1520_p1 = scmp.lt.u32.totalorder %s1042_s20, %s2083_s22 }
 0x508   : > { %p1521_p4 = scmp.lt.u32.totalorder %s1519_s24, %s1515_s30  ;;  %p1523_p13 = scmp.lt.u32.totalorder %s1515_s30, %s1042_s20 }
 0x509   : > { %p1517_p11 = pnand %p1516_p10, %p1799_p12 }
 0x50a   : > { %p1522_p2 = por %p1521_p4, %p1520_p1 }
 0x50b   : > { %p1518_p0 = pneg %p1517_p11 }
 0x50c   : > { %p1524_p3 = por %p1523_p13, %p1522_p2 }
 0x50e   : > { %p1525_p5 = pnand %p1524_p3, %p1518_p0 }
 0x510   : > { %1528 = shalt.err (!%p1525_p5)
}
 0x511   : > { %1362 = dma.vmem_to_hbm [thread:$0]  (%p1799_p12), %s1958_s9, 128, %s1042_s20, %s1016_s0  }
 0x512 PF: > { %s2085_s1 = sld [smem:[#allocation9_spill]]  ;;  %p1372_p6 = scmp.ge.s32.totalorder %s1623_s18, 2 }
 0x514   : > { %p1366_p8 = pnand %p1372_p6, %p1787_p7 }
 0x518   : > { %s1056_s28 = sand.u32 1, %s2085_s1  }
 0x519   : > { %s1057_s27 = scalar_lea.sflag [#allocation3], %s1056_s28 }
 0x51a   : > { %1574 = dma.done.wait (!%p1366_p8), %s1057_s27, 128  }
 0x51b   : > { %1576 = vsyncadd (!%p1366_p8), %s1057_s27, 4294967168  ;;  %s2086_s12 = sld [smem:[#allocation18_spill]]  ;;  %s1065_s19 = sand.u32 1, %s1583_s25  }
 0x51c   : > { %s1066_s15 = scalar_lea.sflag [#allocation5], %s1065_s19 }
 0x521   : > { %p2087_p13 = scmp.ne.s32.totalorder %s2086_s12, 0 }
 0x523   : > { %p1369_p9 = pnand %p1372_p6, %p2087_p13 }
 0x525   : > { %1578 = dma.done.wait (!%p1369_p9), %s1066_s15, 128  }
 0x526   : > { %1580 = vsyncadd (!%p1369_p9), %s1066_s15, 4294967168  ;;  %s30_s18 = sadd.s32 1, %s1623_s18   ;;  %s2088_s0 = sld [smem:[#allocation8_spill]] }
 0x527   : > { %p27_p12 = scmp.ge.s32.totalorder %s30_s18, 10   ;;  %s2089_s27 = sld [smem:[#allocation17_spill]] }
 0x528   : > { %s2090_s10 = sld [smem:[#allocation10_spill]]  ;;  %s2091_s30 = sld [smem:[#allocation16_spill]] }
 0x529   : > { %s2092_s14 = sld [smem:[#allocation11_spill]]  ;;  %s2093_s15 = sld [smem:[#allocation12_spill]] }
 0x52a   : > { %s2094_s16 = sld [smem:[#allocation13_spill]]  ;;  %s2095_s17 = sld [smem:[#allocation15_spill]] }
 0x52b   : > { %s2096_s25 = smov %s1587_s26  ;;  %s2098_s28 = smov %s1599_s29 }
 0x52c   : > { %s2097_s26 = smov %s2088_s0  ;;  %29 = sbr.rel (!%p27_p12) target bundleno = 17 (0x11), region = 154 }
 0x52e   : > { %s2099_s29 = smov %s2090_s10 }
 0x533   :  { %1071 = vsyncpa [#allocation3], 1 }
 0x534   :  { %1073 = vsyncpa [#allocation3 + $0x1], 1 }
 0x535   :  { %1074 = vsyncpa [#allocation5], 1 }
 0x536   :  { %1076 = vsyncpa [#allocation5 + $0x1], 1 }

</bundles_post_ra>
